<compile_context>
chip_gen: v7x
topology: tpu7x:2x2x1
jax: 0.10.0
libtpu: 0.0.40
codegen_flags: <defaults>
</compile_context>

<pallas_src>
import functools

import jax
import jax.numpy as jnp
from jax.experimental import pallas as pl
from jax.experimental.pallas import tpu as pltpu

BN_EPS = 1e-5


def _round_up(x, m):
    return -(-x // m) * m


def _mlp_kernel(dropout_p, small_batch_l1, lane_dense_out, sections,
                seed_ref, b5_ref,                       # SMEM scalars
                x_ref, w1, w2, w3, w4, w5, gb_ref,      # VMEM
                o_ref):
    # Only touch the hardware PRNG when dropout is actually enabled (static).
    if dropout_p > 0.0:
        pltpu.prng_seed(seed_ref[0])

    def dropout(h):
        if dropout_p <= 0.0:                # static: identity (nn.Dropout(0) / eval)
            return h
        # TODO(synk): dropout uses the TPU hardware PRNG stream, not torch's RNG.
        keep_thresh = jnp.uint32(min(int(dropout_p * float(2 ** 32)), 2 ** 32 - 1))
        inv_keep = jnp.float32(1.0 / (1.0 - dropout_p))
        bits = pltpu.bitcast(pltpu.prng_random_bits(h.shape), jnp.uint32)
        return jnp.where(bits >= keep_thresh, h * inv_keep, jnp.float32(0.0))

    def bn_relu_dropout(y, lane_off, width):
        # Single-pass BatchNorm1d (training mode, biased variance), folded affine.
        # gamma/beta come from static lane-aligned slices of the packed slab.
        gamma = gb_ref[0:1, lane_off:lane_off + width]
        beta = gb_ref[1:2, lane_off:lane_off + width]
        inv_b = jnp.float32(1.0 / y.shape[0])
        s1 = jnp.sum(y, axis=0, keepdims=True)
        s2 = jnp.sum(y * y, axis=0, keepdims=True)
        mean = s1 * inv_b
        var = jnp.maximum(s2 * inv_b - mean * mean, 0.0)
        scale = gamma * jax.lax.rsqrt(var + BN_EPS)     # gamma * rsqrt(var+eps)
        shift = beta - mean * scale                     # beta - mean*scale
        return dropout(jnp.maximum(y * scale + shift, 0.0))

    x = x_ref[...].astype(jnp.float32)

    # ---- layer 1: Linear(5 -> node_num); Linear bias cancelled by BN ----
    if small_batch_l1:
        # 5 f32 VPU broadcast-FMAs; skips one MXU load/drain round-trip and is
        # f32-exact for this layer. (w1 is passed as f32 in this mode.)
        w1v = w1[...]
        y = x[:, 0:1] * w1v[0:1, :]
        for k in range(1, 5):
            y = y + x[:, k:k + 1] * w1v[k:k + 1, :]
    else:
        y = jnp.dot(x.astype(jnp.bfloat16), w1[...],
                    preferred_element_type=jnp.float32)

    (o1, d1), (o2, d2), (o3, d3), (o4, d4) = sections
    h = bn_relu_dropout(y, o1, d1)

    # ---- layers 2-4: bf16 MXU operands, f32 accumulate; bias cancelled by BN ----
    h = jnp.dot(h.astype(jnp.bfloat16), w2[...], preferred_element_type=jnp.float32)
    h = bn_relu_dropout(h, o2, d2)
    h = jnp.dot(h.astype(jnp.bfloat16), w3[...], preferred_element_type=jnp.float32)
    h = bn_relu_dropout(h, o3, d3)
    h = jnp.dot(h.astype(jnp.bfloat16), w4[...], preferred_element_type=jnp.float32)
    h = bn_relu_dropout(h, o4, d4)

    # ---- layer 5: Linear(30 -> 1) ----
    if lane_dense_out:
        # Lane-dense [1, batch] row: w5t [1,30] contracted with h [B,30] on dim 1.
        out = jax.lax.dot_general(
            w5[...], h.astype(jnp.bfloat16),
            dimension_numbers=(((1,), (1,)), ((), ())),
            preferred_element_type=jnp.float32)
        o_ref[...] = (out + b5_ref[0]).astype(o_ref.dtype)
    else:
        # Small batch: plain [B,30] x [30,1] column; store is masked either way.
        out = jnp.dot(h.astype(jnp.bfloat16), w5[...],
                      preferred_element_type=jnp.float32)
        o_ref[...] = (out + b5_ref[0]).astype(o_ref.dtype)


def init_params(key, node_num):
    """Deterministic params (PyTorch Linear-style uniform init, BN weight=1/bias=0)."""
    dims = [5, node_num, 200, 150, 30, 1]
    ws, bs, gammas, betas = [], [], [], []
    layer_keys = jax.random.split(key, 5)
    for i in range(5):
        fan_in, fan_out = dims[i], dims[i + 1]
        bound = 1.0 / (fan_in ** 0.5)
        wk, bk = jax.random.split(layer_keys[i])
        ws.append(jax.random.uniform(wk, (fan_in, fan_out), jnp.float32, -bound, bound))
        bs.append(jax.random.uniform(bk, (fan_out,), jnp.float32, -bound, bound))
        if i < 4:
            gammas.append(jnp.ones((fan_out,), jnp.float32))
            betas.append(jnp.zeros((fan_out,), jnp.float32))
    return dims, ws, bs, gammas, betas


def _vmem_budget_bytes():
    """Per-TensorCore VMEM budget with headroom for Mosaic internal scratch."""
    try:
        cap = int(pltpu.get_tpu_info().vmem_capacity_bytes)
    except Exception:
        cap = 64 * 1024 * 1024          # conservative: v7x per-TC physical VMEM
    return (cap * 3) // 4


def mlp_forward(x, dims, ws, bs, gammas, betas, *, dropout_p=0.0, seed=0):
    x2 = x.reshape(-1, 5).astype(jnp.float32)        # x.view(-1, 5)
    batch = x2.shape[0]

    # ---- VMEM footprint: lane-padded f32 activations + weights + slack ----
    act_lanes = 128 + sum(_round_up(d, 128) for d in dims[1:5])   # x + 4 hiddens
    vmem_est = int(batch * act_lanes * 4 * 1.5) + (2 << 20)       # 1.5x temp headroom
    budget = _vmem_budget_bytes()
    assert vmem_est <= budget, (
        f"fused full-batch-BN kernel needs ~{vmem_est} B of VMEM but budget is "
        f"{budget} B; reduce batch or switch to a per-layer two-pass-BN design")
    vmem_limit = min(max(vmem_est, 8 << 20), budget)

    # ---- static code-path selection ----
    small_batch_l1 = batch <= 64        # layer-1 on the VPU (f32 FMAs)
    lane_dense_out = batch >= 128       # [1, batch] lane-dense output row

    # bf16 weights at the MXU boundary (halves weight DMA/VMEM bytes too).
    w1 = ws[0] if small_batch_l1 else ws[0].astype(jnp.bfloat16)
    w2b, w3b, w4b = (w.astype(jnp.bfloat16) for w in ws[1:4])
    w5 = (ws[4].T if lane_dense_out else ws[4]).astype(jnp.bfloat16)

    # Pack the four (gamma, beta) pairs into one lane-aligned [2, total] slab.
    offs, total = [], 0
    for d in dims[1:5]:
        offs.append(total)
        total += _round_up(d, 128)
    gb = jnp.zeros((2, total), jnp.float32)
    for off, d, g, b in zip(offs, dims[1:5], gammas, betas):
        gb = gb.at[0, off:off + d].set(g)
        gb = gb.at[1, off:off + d].set(b)
    sections = tuple((off, d) for off, d in zip(offs, dims[1:5]))

    seed_arr = jnp.array([seed], dtype=jnp.int32)
    b5_arr = bs[4].astype(jnp.float32)               # (1,) scalar in SMEM
    # (Linear biases 1-4 are mathematically cancelled by batch-stat BatchNorm.)

    n1 = dims[1]
    flops = 2 * batch * (5 * n1 + n1 * 200 + 200 * 150 + 150 * 30 + 30 * 1)
    bytes_accessed = (x2.size * 4 + sum(int(w.size) for w in ws) * 2
                      + gb.size * 4 + batch * 4)
    cost = pl.CostEstimate(flops=flops,
                           transcendentals=n1 + 200 + 150 + 30,
                           bytes_accessed=bytes_accessed)

    kernel = functools.partial(_mlp_kernel, float(dropout_p),
                               small_batch_l1, lane_dense_out, sections)
    smem = pl.BlockSpec(memory_space=pltpu.MemorySpace.SMEM)
    vmem = pl.BlockSpec(memory_space=pltpu.MemorySpace.VMEM)
    out_shape = ((1, batch) if lane_dense_out else (batch, 1))

    out = pl.pallas_call(
        kernel,
        out_shape=jax.ShapeDtypeStruct(out_shape, jnp.float32),
        in_specs=[smem, smem] + [vmem] * 7,
        out_specs=vmem,
        compiler_params=pltpu.CompilerParams(vmem_limit_bytes=vmem_limit),
        cost_estimate=cost,
    )(seed_arr, b5_arr, x2, w1, w2b, w3b, w4b, w5, gb)
    return out.reshape(batch, 1)                     # always [batch, 1]


if __name__ == "__main__":
    node_num = 64
    dropout_p = 0.0          # nn.Dropout(0.0): identity (deterministic run)
    batch = 16

    root = jax.random.PRNGKey(0)
    k_x, k_p = jax.random.split(root)
    x = jax.random.normal(k_x, (batch, 5), dtype=jnp.float32)
    dims, ws, bs, gammas, betas = init_params(k_p, node_num)

    out = mlp_forward(x, dims, ws, bs, gammas, betas, dropout_p=dropout_p, seed=0)
    out = jax.block_until_ready(out)
    assert out.shape == (batch, 1) and out.dtype == jnp.float32
    assert bool(jnp.all(jnp.isfinite(out)))
    print("KERNEL_OK")
</pallas_src>

<mosaic_0001>
module attributes {stable_mosaic.version = 11 : i64} {
  func.func @_mlp_kernel(%arg0: memref<1xi32, #tpu.memory_space<smem>>, %arg1: memref<1xf32, #tpu.memory_space<smem>>, %arg2: memref<16x5xf32, #tpu.memory_space<vmem>>, %arg3: memref<5x64xf32, #tpu.memory_space<vmem>>, %arg4: memref<64x200xbf16, #tpu.memory_space<vmem>>, %arg5: memref<200x150xbf16, #tpu.memory_space<vmem>>, %arg6: memref<150x30xbf16, #tpu.memory_space<vmem>>, %arg7: memref<30x1xbf16, #tpu.memory_space<vmem>>, %arg8: memref<2x768xf32, #tpu.memory_space<vmem>>, %arg9: memref<16x1xf32, #tpu.memory_space<vmem>>) attributes {dimension_semantics = [], scalar_prefetch = 0 : i64, scratch_operands = 0 : i64, tpu.core_type = #tpu.core_type<tc>} {
    %c0 = arith.constant 0 : index
    %c0_0 = arith.constant 0 : index
    %0 = vector.load %arg2[%c0, %c0_0] : memref<16x5xf32, #tpu.memory_space<vmem>>, vector<16x5xf32>
    %c0_1 = arith.constant 0 : index
    %c0_2 = arith.constant 0 : index
    %1 = vector.load %arg3[%c0_1, %c0_2] : memref<5x64xf32, #tpu.memory_space<vmem>>, vector<5x64xf32>
    %2 = vector.extract_strided_slice %0 {offsets = [0, 0], sizes = [16, 1], strides = [1, 1]} : vector<16x5xf32> to vector<16x1xf32>
    %3 = vector.extract_strided_slice %1 {offsets = [0, 0], sizes = [1, 64], strides = [1, 1]} : vector<5x64xf32> to vector<1x64xf32>
    %4 = vector.broadcast %2 : vector<16x1xf32> to vector<16x64xf32>
    %5 = vector.broadcast %3 : vector<1x64xf32> to vector<16x64xf32>
    %6 = arith.mulf %4, %5 : vector<16x64xf32>
    %7 = vector.extract_strided_slice %0 {offsets = [0, 1], sizes = [16, 1], strides = [1, 1]} : vector<16x5xf32> to vector<16x1xf32>
    %8 = vector.extract_strided_slice %1 {offsets = [1, 0], sizes = [1, 64], strides = [1, 1]} : vector<5x64xf32> to vector<1x64xf32>
    %9 = vector.broadcast %7 : vector<16x1xf32> to vector<16x64xf32>
    %10 = vector.broadcast %8 : vector<1x64xf32> to vector<16x64xf32>
    %11 = arith.mulf %9, %10 : vector<16x64xf32>
    %12 = arith.addf %6, %11 : vector<16x64xf32>
    %13 = vector.extract_strided_slice %0 {offsets = [0, 2], sizes = [16, 1], strides = [1, 1]} : vector<16x5xf32> to vector<16x1xf32>
    %14 = vector.extract_strided_slice %1 {offsets = [2, 0], sizes = [1, 64], strides = [1, 1]} : vector<5x64xf32> to vector<1x64xf32>
    %15 = vector.broadcast %13 : vector<16x1xf32> to vector<16x64xf32>
    %16 = vector.broadcast %14 : vector<1x64xf32> to vector<16x64xf32>
    %17 = arith.mulf %15, %16 : vector<16x64xf32>
    %18 = arith.addf %12, %17 : vector<16x64xf32>
    %19 = vector.extract_strided_slice %0 {offsets = [0, 3], sizes = [16, 1], strides = [1, 1]} : vector<16x5xf32> to vector<16x1xf32>
    %20 = vector.extract_strided_slice %1 {offsets = [3, 0], sizes = [1, 64], strides = [1, 1]} : vector<5x64xf32> to vector<1x64xf32>
    %21 = vector.broadcast %19 : vector<16x1xf32> to vector<16x64xf32>
    %22 = vector.broadcast %20 : vector<1x64xf32> to vector<16x64xf32>
    %23 = arith.mulf %21, %22 : vector<16x64xf32>
    %24 = arith.addf %18, %23 : vector<16x64xf32>
    %25 = vector.extract_strided_slice %0 {offsets = [0, 4], sizes = [16, 1], strides = [1, 1]} : vector<16x5xf32> to vector<16x1xf32>
    %26 = vector.extract_strided_slice %1 {offsets = [4, 0], sizes = [1, 64], strides = [1, 1]} : vector<5x64xf32> to vector<1x64xf32>
    %27 = vector.broadcast %25 : vector<16x1xf32> to vector<16x64xf32>
    %28 = vector.broadcast %26 : vector<1x64xf32> to vector<16x64xf32>
    %29 = arith.mulf %27, %28 : vector<16x64xf32>
    %30 = arith.addf %24, %29 : vector<16x64xf32>
    %c0_3 = arith.constant 0 : index
    %c0_4 = arith.constant 0 : index
    %31 = vector.load %arg8[%c0_3, %c0_4] : memref<2x768xf32, #tpu.memory_space<vmem>>, vector<1x64xf32>
    %c1 = arith.constant 1 : index
    %c0_5 = arith.constant 0 : index
    %32 = vector.load %arg8[%c1, %c0_5] : memref<2x768xf32, #tpu.memory_space<vmem>>, vector<1x64xf32>
    %cst = arith.constant dense<0.000000e+00> : vector<64xf32>
    %33 = vector.multi_reduction <add>, %30, %cst [0] : vector<16x64xf32> to vector<64xf32>
    %34 = vector.shape_cast %33 : vector<64xf32> to vector<1x64xf32>
    %35 = arith.mulf %30, %30 : vector<16x64xf32>
    %cst_6 = arith.constant dense<0.000000e+00> : vector<64xf32>
    %36 = vector.multi_reduction <add>, %35, %cst_6 [0] : vector<16x64xf32> to vector<64xf32>
    %37 = vector.shape_cast %36 : vector<64xf32> to vector<1x64xf32>
    %cst_7 = arith.constant 6.250000e-02 : f32
    %38 = vector.broadcast %cst_7 : f32 to vector<1x64xf32>
    %39 = arith.mulf %34, %38 : vector<1x64xf32>
    %cst_8 = arith.constant 6.250000e-02 : f32
    %40 = vector.broadcast %cst_8 : f32 to vector<1x64xf32>
    %41 = arith.mulf %37, %40 : vector<1x64xf32>
    %42 = arith.mulf %39, %39 : vector<1x64xf32>
    %43 = arith.subf %41, %42 : vector<1x64xf32>
    %cst_9 = arith.constant 0.000000e+00 : f32
    %44 = vector.broadcast %cst_9 : f32 to vector<1x64xf32>
    %45 = arith.maximumf %43, %44 : vector<1x64xf32>
    %cst_10 = arith.constant 9.99999974E-6 : f32
    %46 = vector.broadcast %cst_10 : f32 to vector<1x64xf32>
    %47 = arith.addf %45, %46 : vector<1x64xf32>
    %48 = math.rsqrt %47 : vector<1x64xf32>
    %49 = arith.mulf %31, %48 : vector<1x64xf32>
    %50 = arith.mulf %39, %49 : vector<1x64xf32>
    %51 = arith.subf %32, %50 : vector<1x64xf32>
    %52 = vector.broadcast %49 : vector<1x64xf32> to vector<16x64xf32>
    %53 = arith.mulf %30, %52 : vector<16x64xf32>
    %54 = vector.broadcast %51 : vector<1x64xf32> to vector<16x64xf32>
    %55 = arith.addf %53, %54 : vector<16x64xf32>
    %cst_11 = arith.constant 0.000000e+00 : f32
    %56 = vector.broadcast %cst_11 : f32 to vector<16x64xf32>
    %57 = arith.maximumf %55, %56 : vector<16x64xf32>
    %58 = arith.truncf %57 : vector<16x64xf32> to vector<16x64xbf16>
    %c0_12 = arith.constant 0 : index
    %c0_13 = arith.constant 0 : index
    %59 = vector.load %arg4[%c0_12, %c0_13] : memref<64x200xbf16, #tpu.memory_space<vmem>>, vector<64x200xbf16>
    %cst_14 = arith.constant dense<0.000000e+00> : vector<16x200xf32>
    %60 = tpu.matmul %58, %59, %cst_14 {dimension_numbers = #tpu.dot_dimension_numbers<[1], [0], [0], [1], [0, 0, 1, 1], [], []>} : vector<16x64xbf16>, vector<64x200xbf16>, vector<16x200xf32> -> vector<16x200xf32>
    %c0_15 = arith.constant 0 : index
    %c128 = arith.constant 128 : index
    %61 = vector.load %arg8[%c0_15, %c128] : memref<2x768xf32, #tpu.memory_space<vmem>>, vector<1x200xf32>
    %c1_16 = arith.constant 1 : index
    %c128_17 = arith.constant 128 : index
    %62 = vector.load %arg8[%c1_16, %c128_17] : memref<2x768xf32, #tpu.memory_space<vmem>>, vector<1x200xf32>
    %cst_18 = arith.constant dense<0.000000e+00> : vector<200xf32>
    %63 = vector.multi_reduction <add>, %60, %cst_18 [0] : vector<16x200xf32> to vector<200xf32>
    %64 = vector.shape_cast %63 : vector<200xf32> to vector<1x200xf32>
    %65 = arith.mulf %60, %60 : vector<16x200xf32>
    %cst_19 = arith.constant dense<0.000000e+00> : vector<200xf32>
    %66 = vector.multi_reduction <add>, %65, %cst_19 [0] : vector<16x200xf32> to vector<200xf32>
    %67 = vector.shape_cast %66 : vector<200xf32> to vector<1x200xf32>
    %cst_20 = arith.constant 6.250000e-02 : f32
    %68 = vector.broadcast %cst_20 : f32 to vector<1x200xf32>
    %69 = arith.mulf %64, %68 : vector<1x200xf32>
    %cst_21 = arith.constant 6.250000e-02 : f32
    %70 = vector.broadcast %cst_21 : f32 to vector<1x200xf32>
    %71 = arith.mulf %67, %70 : vector<1x200xf32>
    %72 = arith.mulf %69, %69 : vector<1x200xf32>
    %73 = arith.subf %71, %72 : vector<1x200xf32>
    %cst_22 = arith.constant 0.000000e+00 : f32
    %74 = vector.broadcast %cst_22 : f32 to vector<1x200xf32>
    %75 = arith.maximumf %73, %74 : vector<1x200xf32>
    %cst_23 = arith.constant 9.99999974E-6 : f32
    %76 = vector.broadcast %cst_23 : f32 to vector<1x200xf32>
    %77 = arith.addf %75, %76 : vector<1x200xf32>
    %78 = math.rsqrt %77 : vector<1x200xf32>
    %79 = arith.mulf %61, %78 : vector<1x200xf32>
    %80 = arith.mulf %69, %79 : vector<1x200xf32>
    %81 = arith.subf %62, %80 : vector<1x200xf32>
    %82 = vector.broadcast %79 : vector<1x200xf32> to vector<16x200xf32>
    %83 = arith.mulf %60, %82 : vector<16x200xf32>
    %84 = vector.broadcast %81 : vector<1x200xf32> to vector<16x200xf32>
    %85 = arith.addf %83, %84 : vector<16x200xf32>
    %cst_24 = arith.constant 0.000000e+00 : f32
    %86 = vector.broadcast %cst_24 : f32 to vector<16x200xf32>
    %87 = arith.maximumf %85, %86 : vector<16x200xf32>
    %88 = arith.truncf %87 : vector<16x200xf32> to vector<16x200xbf16>
    %c0_25 = arith.constant 0 : index
    %c0_26 = arith.constant 0 : index
    %89 = vector.load %arg5[%c0_25, %c0_26] : memref<200x150xbf16, #tpu.memory_space<vmem>>, vector<200x150xbf16>
    %cst_27 = arith.constant dense<0.000000e+00> : vector<16x150xf32>
    %90 = tpu.matmul %88, %89, %cst_27 {dimension_numbers = #tpu.dot_dimension_numbers<[1], [0], [0], [1], [0, 0, 1, 1], [], []>} : vector<16x200xbf16>, vector<200x150xbf16>, vector<16x150xf32> -> vector<16x150xf32>
    %c0_28 = arith.constant 0 : index
    %c384 = arith.constant 384 : index
    %91 = vector.load %arg8[%c0_28, %c384] : memref<2x768xf32, #tpu.memory_space<vmem>>, vector<1x150xf32>
    %c1_29 = arith.constant 1 : index
    %c384_30 = arith.constant 384 : index
    %92 = vector.load %arg8[%c1_29, %c384_30] : memref<2x768xf32, #tpu.memory_space<vmem>>, vector<1x150xf32>
    %cst_31 = arith.constant dense<0.000000e+00> : vector<150xf32>
    %93 = vector.multi_reduction <add>, %90, %cst_31 [0] : vector<16x150xf32> to vector<150xf32>
    %94 = vector.shape_cast %93 : vector<150xf32> to vector<1x150xf32>
    %95 = arith.mulf %90, %90 : vector<16x150xf32>
    %cst_32 = arith.constant dense<0.000000e+00> : vector<150xf32>
    %96 = vector.multi_reduction <add>, %95, %cst_32 [0] : vector<16x150xf32> to vector<150xf32>
    %97 = vector.shape_cast %96 : vector<150xf32> to vector<1x150xf32>
    %cst_33 = arith.constant 6.250000e-02 : f32
    %98 = vector.broadcast %cst_33 : f32 to vector<1x150xf32>
    %99 = arith.mulf %94, %98 : vector<1x150xf32>
    %cst_34 = arith.constant 6.250000e-02 : f32
    %100 = vector.broadcast %cst_34 : f32 to vector<1x150xf32>
    %101 = arith.mulf %97, %100 : vector<1x150xf32>
    %102 = arith.mulf %99, %99 : vector<1x150xf32>
    %103 = arith.subf %101, %102 : vector<1x150xf32>
    %cst_35 = arith.constant 0.000000e+00 : f32
    %104 = vector.broadcast %cst_35 : f32 to vector<1x150xf32>
    %105 = arith.maximumf %103, %104 : vector<1x150xf32>
    %cst_36 = arith.constant 9.99999974E-6 : f32
    %106 = vector.broadcast %cst_36 : f32 to vector<1x150xf32>
    %107 = arith.addf %105, %106 : vector<1x150xf32>
    %108 = math.rsqrt %107 : vector<1x150xf32>
    %109 = arith.mulf %91, %108 : vector<1x150xf32>
    %110 = arith.mulf %99, %109 : vector<1x150xf32>
    %111 = arith.subf %92, %110 : vector<1x150xf32>
    %112 = vector.broadcast %109 : vector<1x150xf32> to vector<16x150xf32>
    %113 = arith.mulf %90, %112 : vector<16x150xf32>
    %114 = vector.broadcast %111 : vector<1x150xf32> to vector<16x150xf32>
    %115 = arith.addf %113, %114 : vector<16x150xf32>
    %cst_37 = arith.constant 0.000000e+00 : f32
    %116 = vector.broadcast %cst_37 : f32 to vector<16x150xf32>
    %117 = arith.maximumf %115, %116 : vector<16x150xf32>
    %118 = arith.truncf %117 : vector<16x150xf32> to vector<16x150xbf16>
    %c0_38 = arith.constant 0 : index
    %c0_39 = arith.constant 0 : index
    %119 = vector.load %arg6[%c0_38, %c0_39] : memref<150x30xbf16, #tpu.memory_space<vmem>>, vector<150x30xbf16>
    %cst_40 = arith.constant dense<0.000000e+00> : vector<16x30xf32>
    %120 = tpu.matmul %118, %119, %cst_40 {dimension_numbers = #tpu.dot_dimension_numbers<[1], [0], [0], [1], [0, 0, 1, 1], [], []>} : vector<16x150xbf16>, vector<150x30xbf16>, vector<16x30xf32> -> vector<16x30xf32>
    %c0_41 = arith.constant 0 : index
    %c640 = arith.constant 640 : index
    %121 = vector.load %arg8[%c0_41, %c640] : memref<2x768xf32, #tpu.memory_space<vmem>>, vector<1x30xf32>
    %c1_42 = arith.constant 1 : index
    %c640_43 = arith.constant 640 : index
    %122 = vector.load %arg8[%c1_42, %c640_43] : memref<2x768xf32, #tpu.memory_space<vmem>>, vector<1x30xf32>
    %cst_44 = arith.constant dense<0.000000e+00> : vector<30xf32>
    %123 = vector.multi_reduction <add>, %120, %cst_44 [0] : vector<16x30xf32> to vector<30xf32>
    %124 = vector.shape_cast %123 : vector<30xf32> to vector<1x30xf32>
    %125 = arith.mulf %120, %120 : vector<16x30xf32>
    %cst_45 = arith.constant dense<0.000000e+00> : vector<30xf32>
    %126 = vector.multi_reduction <add>, %125, %cst_45 [0] : vector<16x30xf32> to vector<30xf32>
    %127 = vector.shape_cast %126 : vector<30xf32> to vector<1x30xf32>
    %cst_46 = arith.constant 6.250000e-02 : f32
    %128 = vector.broadcast %cst_46 : f32 to vector<1x30xf32>
    %129 = arith.mulf %124, %128 : vector<1x30xf32>
    %cst_47 = arith.constant 6.250000e-02 : f32
    %130 = vector.broadcast %cst_47 : f32 to vector<1x30xf32>
    %131 = arith.mulf %127, %130 : vector<1x30xf32>
    %132 = arith.mulf %129, %129 : vector<1x30xf32>
    %133 = arith.subf %131, %132 : vector<1x30xf32>
    %cst_48 = arith.constant 0.000000e+00 : f32
    %134 = vector.broadcast %cst_48 : f32 to vector<1x30xf32>
    %135 = arith.maximumf %133, %134 : vector<1x30xf32>
    %cst_49 = arith.constant 9.99999974E-6 : f32
    %136 = vector.broadcast %cst_49 : f32 to vector<1x30xf32>
    %137 = arith.addf %135, %136 : vector<1x30xf32>
    %138 = math.rsqrt %137 : vector<1x30xf32>
    %139 = arith.mulf %121, %138 : vector<1x30xf32>
    %140 = arith.mulf %129, %139 : vector<1x30xf32>
    %141 = arith.subf %122, %140 : vector<1x30xf32>
    %142 = vector.broadcast %139 : vector<1x30xf32> to vector<16x30xf32>
    %143 = arith.mulf %120, %142 : vector<16x30xf32>
    %144 = vector.broadcast %141 : vector<1x30xf32> to vector<16x30xf32>
    %145 = arith.addf %143, %144 : vector<16x30xf32>
    %cst_50 = arith.constant 0.000000e+00 : f32
    %146 = vector.broadcast %cst_50 : f32 to vector<16x30xf32>
    %147 = arith.maximumf %145, %146 : vector<16x30xf32>
    %148 = arith.truncf %147 : vector<16x30xf32> to vector<16x30xbf16>
    %c0_51 = arith.constant 0 : index
    %c0_52 = arith.constant 0 : index
    %149 = vector.load %arg7[%c0_51, %c0_52] : memref<30x1xbf16, #tpu.memory_space<vmem>>, vector<30x1xbf16>
    %cst_53 = arith.constant dense<0.000000e+00> : vector<16x1xf32>
    %150 = tpu.matmul %148, %149, %cst_53 {dimension_numbers = #tpu.dot_dimension_numbers<[1], [0], [0], [1], [0, 0, 1, 1], [], []>} : vector<16x30xbf16>, vector<30x1xbf16>, vector<16x1xf32> -> vector<16x1xf32>
    %c0_54 = arith.constant 0 : index
    %151 = memref.load %arg1[%c0_54] : memref<1xf32, #tpu.memory_space<smem>>
    %152 = vector.broadcast %151 : f32 to vector<16x1xf32>
    %153 = arith.addf %150, %152 : vector<16x1xf32>
    %c0_55 = arith.constant 0 : index
    %c0_56 = arith.constant 0 : index
    %154 = vector.load %arg9[%c0_55, %c0_56] : memref<16x1xf32, #tpu.memory_space<vmem>>, vector<16x1xf32>
    tpu.vector_store %arg9[%c0_55, %c0_56], %153 {strides = array<i32>} : memref<16x1xf32, #tpu.memory_space<vmem>>, vector<16x1xf32>,
    return
  }
}

</mosaic_0001>

<bundles_post_ra>
// kernel: tpu_custom_call.1
= control target key start
LH: loop header
LB: loop body
LE: loop exit
PB: predicated region body
PF: predicated region fallthrough
CT: control target
= control target key end

     0   :  { %v1125_v0 = vmov 1   ;;  %v1126_v1 = vmov 0   ;;  %v1127_v4 = vmov 2   ;;  %v1128_v5 = vmov 3   ;;  %s1464_s2 = inlined_call_operand.vmem [shape: f32[16,5], index: 2, kind: input, shape index: {}]   ;;  %s1465_s0 = inlined_call_operand.<no memory space> [shape: s32[1], index: 0, kind: input, shape index: {}]   ;;  %s1466_s4 = inlined_call_operand.vmem [shape: bf16[64,200], index: 4, kind: input, shape index: {}]   ;;  %s1467_s3 = inlined_call_operand.vmem [shape: f32[5,64], index: 3, kind: input, shape index: {}]   ;;  %s1468_s8 = inlined_call_operand.vmem [shape: f32[2,768], index: 8, kind: input, shape index: {}]   ;;  %s1469_s5 = inlined_call_operand.vmem [shape: bf16[200,150], index: 5, kind: input, shape index: {}]   ;;  %s1470_s6 = inlined_call_operand.vmem [shape: bf16[150,30], index: 6, kind: input, shape index: {}]   ;;  %s1471_s7 = inlined_call_operand.vmem [shape: bf16[30,1], index: 7, kind: input, shape index: {}]   ;;  %s1472_s1 = inlined_call_operand.<no memory space> [shape: f32[1], index: 1, kind: input, shape index: {}]   ;;  %s1473_s9 = inlined_call_operand.vmem [shape: f32[16,1], index: 9, kind: output, shape index: {}]  }
   0x1   :  { %1044 = vset.pattern.permute.xlu1 %v1125_v0  ;;  %1043 = vset.pattern.permute.xlu0 %v1126_v1  ;;  %v35_v2 = vld [vmem:[%s1464_s2] sm:$0xff]  ;;  %v36_v3 = vld [vmem:[%s1464_s2 + $0x8] sm:$0xff]  ;;  %v1129_v6 = vmov 4   ;;  %v1054_v9 = vld [vmem:[%s1466_s4 + $0x14] ss:$8 sps:$4 sm:$0xff]   ;;  %v48_v15 = vlaneseq  ;;  %vm120_vm0 = vcmask 523264  }
   0x2   :  { %55 = vperm.xlu1 %1044, %v35_v2   ;;  %40 = vperm.xlu0 %1043, %v35_v2   ;;  %v1051_v7 = vld [vmem:[%s1466_s4 + $0x4] ss:$8 sps:$4 sm:$0xff]   ;;  %v1053_v8 = vld [vmem:[%s1466_s4] ss:$8 sps:$4 sm:$0xff]   ;;  %v1056_v10 = vld [vmem:[%s1466_s4 + $0x10] ss:$8 sps:$4 sm:$0xff]  }
   0x3   :  { %249 = vmatprep.mubr.bf16.mxu0 %v1126_v1  ;;  %217 = vmatprep.subr.bf16.mxu0 %v1051_v7  ;;  %v1057_v11 = vld [vmem:[%s1466_s4 + $0x24] ss:$8 sps:$4 sm:$0xff]   ;;  %v1059_v12 = vld [vmem:[%s1466_s4 + $0x20] ss:$8 sps:$4 sm:$0xff]   ;;  %v1060_v13 = vld [vmem:[%s1466_s4 + $0x34] ss:$8 sps:$4 sm:$0xff]  }
   0x4   :  { %218 = vmatpush1.bf16.msra.mxu0 %v1053_v8  ;;  %v1062_v14 = vld [vmem:[%s1466_s4 + $0x30] ss:$8 sps:$4 sm:$0xff]   ;;  %v1216_v16 = vshrl.u32 %v48_v15, 7  ;;  %v37_v22 = vld [vmem:[%s1467_s3] sm:$0x1f]  ;;  %vm544_vm1 = vcmask 1043456  }
   0x5   :  { %219 = vmatprep.subr.bf16.mxu0 %v1054_v9  ;;  %vm271_vm2 = vcmask 588800   ;;  %vm804_vm3 = vcmask 1042432   ;;  %vm605_vm4 = vcmask 179200   ;;  %vm917_vm5 = vcmask 1046528  }
   0x6   :  { %59 = vperm.xlu1 %1044, %v36_v3   ;;  %45 = vperm.xlu0 %1043, %v36_v3   ;;  %v1219_v19 = vsub.s32 1, %v1216_v16  ;;  %v1222_v20 = vsub.s32 0, %v1216_v16  ;;  %v80_v24 = vsub.s32 2, %v1216_v16  ;;  %v96_v27 = vsub.s32 3, %v1216_v16 }
   0x7   :  { %v112_v31 = vsub.s32 4, %v1216_v16  ;;  %vm1132_vm6 = vmmov 0   ;;  %vm851_vm7 = vcmask 244736   ;;  %vm962_vm8 = vcmask 7168  }
   0x8   :  { %220 = vmatpush1.bf16.msra.mxu0 %v1056_v10  ;;  %v65_v25 = vrot.slane %v37_v22, %v1219_v19  ;;  %v51_v26 = vrot.slane %v37_v22, %v1222_v20  ;;  %v81_v29 = vrot.slane %v37_v22, %v80_v24  ;;  %v97_v34 = vrot.slane %v37_v22, %v96_v27 }
   0x9   :  { %221 = vmatprep.subr.bf16.mxu0 %v1057_v11  ;;  %v113_v37 = vrot.slane %v37_v22, %v112_v31  ;;  %v118_v22 = vld [vmem:[%s1468_s8] sm:$0x1] }
   0xa   :  { %1046 = vset.pattern.permute.xlu1 %v1127_v4  ;;  %1045 = vset.pattern.permute.xlu0 %v1127_v4 }
   0xb   :  { %75 = vperm.xlu1 %1046, %v36_v3   ;;  %71 = vperm.xlu0 %1045, %v35_v2  }
   0xc   :  { %222 = vmatpush1.bf16.msra.mxu0 %v1059_v12 }
   0xd   :  { %223 = vmatprep.subr.bf16.mxu0 %v1060_v13 }
   0xf   :  { %1047 = vset.pattern.permute.xlu1 %v1128_v5  ;;  %1048 = vset.pattern.permute.xlu0 %v1128_v5 }
  0x10   :  { %87 = vperm.xlu1 %1047, %v35_v2   ;;  %91 = vperm.xlu0 %1048, %v36_v3  }
  0x11   :  { %224 = vmatpush1.bf16.msra.mxu0 %v1062_v14 }
  0x12   :  { %808 = vmatprep.subr.bf16.mxu0 %v1126_v1 }
  0x14   :  { %1049 = vset.pattern.permute.xlu1 %v1129_v6  ;;  %1050 = vset.pattern.permute.xlu0 %v1129_v6 }
  0x15   :  { %103 = vperm.xlu1 %1049, %v35_v2  }
  0x19   :  { %107 = vperm.xlu1 %1049, %v36_v3  }
  0x81   :  { %v56_v17 = vpop.permute.xlu1 %55  ;;  %v41_v18 = vpop.permute.xlu0 %40 }
  0x82   :  { %v66_v32 = vmul.f32 %v65_v25, %v56_v17  ;;  %v52_v33 = vmul.f32 %v51_v26, %v41_v18 }
  0x84   :  { %v68_v38 = vadd.f32 %v66_v32, %v52_v33 }
  0x85   :  { %v60_v21 = vpop.permute.xlu1 %59  ;;  %v46_v23 = vpop.permute.xlu0 %45 }
  0x86   :  { %v67_v39 = vmul.f32 %v65_v25, %v60_v21  ;;  %v53_v40 = vmul.f32 %v51_v26, %v46_v23  ;;  %v119_v25 = vld [vmem:[%s1468_s8 + $0x1] sm:$0x1] }
  0x88   :  { %v69_v46 = vadd.f32 %v67_v39, %v53_v40  ;;  %v1066_v39 = vld [vmem:[%s1469_s5 + $0x14] ss:$8 sps:$4 sm:$0xff]   ;;  %v1068_v40 = vld [vmem:[%s1469_s5 + $0x10] ss:$8 sps:$4 sm:$0xff]  }
  0x8a   :  { %v76_v28 = vpop.permute.xlu1 %75  ;;  %v72_v30 = vpop.permute.xlu0 %71 }
  0x8b   :  { %v82_v35 = vmul.f32 %v81_v29, %v72_v30  ;;  %v83_v43 = vmul.f32 %v81_v29, %v76_v28 }
  0x8d   :  { %v84_v44 = vadd.f32 %v82_v35, %v68_v38  ;;  %v85_v50 = vadd.f32 %v83_v43, %v69_v46  ;;  %v1065_v38 = vld [vmem:[%s1469_s5] ss:$8 sps:$4 sm:$0xff]   ;;  %v1072_v43 = vld [vmem:[%s1469_s5 + $0x34] ss:$8 sps:$4 sm:$0xff]  }
  0x8e   :  { %v1077_v46 = vld [vmem:[%s1469_s5 + $0x40] ss:$8 sps:$4 sm:$0xff]  }
  0x8f   :  { %v88_v36 = vpop.permute.xlu1 %87  ;;  %v92_v42 = vpop.permute.xlu0 %91 }
  0x90   :  { %v98_v41 = vmul.f32 %v97_v34, %v88_v36  ;;  %v99_v48 = vmul.f32 %v97_v34, %v92_v42  ;;  %v1071_v42 = vld [vmem:[%s1469_s5 + $0x20] ss:$8 sps:$4 sm:$0xff]  }
  0x92   :  { %v100_v47 = vadd.f32 %v98_v41, %v84_v44  ;;  %v101_v53 = vadd.f32 %v99_v48, %v85_v50  ;;  %v1069_v41 = vld [vmem:[%s1469_s5 + $0x24] ss:$8 sps:$4 sm:$0xff]   ;;  %v1074_v44 = vld [vmem:[%s1469_s5 + $0x30] ss:$8 sps:$4 sm:$0xff]   ;;  %v1083_v50 = vld [vmem:[%s1469_s5 + $0x60] ss:$8 sps:$4 sm:$0xff]  }
  0x93   :  { %v1080_v48 = vld [vmem:[%s1469_s5 + $0x50] ss:$8 sps:$4 sm:$0xff]  }
  0x94   :  { %v104_v45 = vpop.permute.xlu1 %103 }
  0x95   :  { %v114_v49 = vmul.f32 %v113_v37, %v104_v45  ;;  %v1075_v45 = vld [vmem:[%s1469_s5 + $0x44] ss:$8 sps:$4 sm:$0xff]  }
  0x97   :  { %v116_v51 = vadd.f32 %v114_v49, %v100_v47  ;;  %v1078_v47 = vld [vmem:[%s1469_s5 + $0x54] ss:$8 sps:$4 sm:$0xff]   ;;  %v1081_v49 = vld [vmem:[%s1469_s5 + $0x64] ss:$8 sps:$4 sm:$0xff]  }
  0x98   :  { %v108_v52 = vpop.permute.xlu1 %107 }
  0x99   :  { %v115_v54 = vmul.f32 %v113_v37, %v108_v52  ;;  %v130_v55 = vmul.f32 %v116_v51, %v116_v51  ;;  %v121_v58 = vsel %vm120_vm0, %v116_v51, 0.0  ;;  %v1063_v37 = vld [vmem:[%s1469_s5 + $0x4] ss:$8 sps:$4 sm:$0xff]   ;;  %v1086_v52 = vld [vmem:[%s1469_s5 + $0x70] ss:$8 sps:$4 sm:$0xff]  }
  0x9a   :  { %551 = vmatprep.subr.bf16.mxu1 %v1063_v37 }
  0x9b   :  { %v117_v56 = vadd.f32 %v115_v54, %v101_v53  ;;  %v132_v61 = vsel %vm120_vm0, %v130_v55, 0.0  ;;  %552 = vmatpush1.bf16.msra.mxu1 %v1065_v38  ;;  %v1087_v53 = vld [vmem:[%s1469_s5 + $0x84] ss:$8 sps:$4 sm:$0xff]   ;;  %v1089_v54 = vld [vmem:[%s1469_s5 + $0x80] ss:$8 sps:$4 sm:$0xff]  }
  0x9c   :  { %553 = vmatprep.subr.bf16.mxu1 %v1066_v39  ;;  %v1090_v55 = vld [vmem:[%s1469_s5 + $0x94] ss:$8 sps:$4 sm:$0xff]  }
  0x9d   :  { %v131_v57 = vmul.f32 %v117_v56, %v117_v56  ;;  %v122_v59 = vsel %vm120_vm0, %v117_v56, 0.0 }
  0x9e   :  { %v123_v60 = vadd.f32 %v122_v59, %v121_v58  ;;  %v1095_v58 = vld [vmem:[%s1469_s5 + $0xa0] ss:$8 sps:$4 sm:$0xff]   ;;  %v1096_v59 = vld [vmem:[%s1469_s5 + $0xb4] ss:$8 sps:$4 sm:$0xff]  }
  0x9f   :  { %v133_v62 = vsel %vm120_vm0, %v131_v57, 0.0  ;;  %554 = vmatpush1.bf16.msra.mxu1 %v1068_v40  ;;  %v1093_v57 = vld [vmem:[%s1469_s5 + $0xa4] ss:$8 sps:$4 sm:$0xff]  }
  0xa0   :  { %v124_v63 = vrot.slane %v123_v60, 4  ;;  %v134_v0 = vadd.f32 %v133_v62, %v132_v61  ;;  %555 = vmatprep.subr.bf16.mxu1 %v1069_v41  ;;  %v1098_v61 = vld [vmem:[%s1469_s5 + $0xb0] ss:$8 sps:$4 sm:$0xff]  }
  0xa2   :  { %v125_v2 = vadd.f32 %v124_v63, %v123_v60  ;;  %v135_v3 = vrot.slane %v134_v0, 4  ;;  %v415_v60 = vld [vmem:[%s1469_s5 + $0xc0] sm:$0xff] }
  0xa3   :  { %556 = vmatpush1.bf16.msra.mxu1 %v1071_v42  ;;  %v1005_v62 = vcombine.high %v415_v60, %v415_v60  ;;  %v1004_v63 = vcombine.low %v415_v60, %v415_v60 }
  0xa4   :  { %v126_v4 = vrot.slane %v125_v2, 2  ;;  %v136_v5 = vadd.f32 %v135_v3, %v134_v0  ;;  %557 = vmatprep.subr.bf16.mxu1 %v1072_v43 }
  0xa5   :  { %v546_v0 = vsel %vm544_vm1, %v1004_v63, 0 }
  0xa6   :  { %v127_v6 = vadd.f32 %v126_v4, %v125_v2  ;;  %v137_v7 = vrot.slane %v136_v5, 2 }
  0xa7   :  { %558 = vmatpush1.bf16.msra.mxu1 %v1074_v44 }
  0xa8   :  { %v128_v8 = vrot.slane %v127_v6, 1  ;;  %v138_v9 = vadd.f32 %v137_v7, %v136_v5  ;;  %559 = vmatprep.subr.bf16.mxu1 %v1075_v45 }
  0xaa   :  { %v129_v10 = vadd.f32 %v128_v8, %v127_v6  ;;  %v139_v11 = vrot.slane %v138_v9, 1 }
  0xab   :  { %560 = vmatpush1.bf16.msra.mxu1 %v1077_v46 }
  0xac   :  { %v140_v12 = vadd.f32 %v139_v11, %v138_v9  ;;  %v141_v13 = vmul.f32 0.0625, %v129_v10  ;;  %561 = vmatprep.subr.bf16.mxu1 %v1078_v47 }
  0xae   :  { %v142_v14 = vmul.f32 0.0625, %v140_v12  ;;  %v143_v15 = vmul.f32 %v141_v13, %v141_v13 }
  0xaf   :  { %562 = vmatpush1.bf16.msra.mxu1 %v1080_v48 }
  0xb0   :  { %v144_v17 = vsub.f32 %v142_v14, %v143_v15  ;;  %563 = vmatprep.subr.bf16.mxu1 %v1081_v49 }
  0xb2   :  { %v145_v18 = vmax.f32 %v144_v17, 0.0 }
  0xb3   :  { %564 = vmatpush1.bf16.msra.mxu1 %v1083_v50 }
  0xb4   :  { %v146_v21 = vadd.f32 1e-05, %v145_v18 }
  0xb6   :  { %1113 = vrsqrt.f32 %v146_v21 }
  0xc0   :  { %v1114_v23 = vpop.eup %1113 }
  0xc1   :  { %v148_v24 = vmul.f32 %v1114_v23, %v118_v22 }
  0xc3   :  { %v149_v26 = vmul.f32 %v148_v24, %v141_v13  ;;  %v154_v27 = vrot.slane %v148_v24, %v1222_v20 }
  0xc5   :  { %v150_v28 = vsub.f32 %v119_v25, %v149_v26  ;;  %v155_v29 = vmul.f32 %v154_v27, %v116_v51  ;;  %v156_v30 = vmul.f32 %v154_v27, %v117_v56  ;;  %v1084_v51 = vld [vmem:[%s1469_s5 + $0x74] ss:$8 sps:$4 sm:$0xff]   ;;  %v1092_v56 = vld [vmem:[%s1469_s5 + $0x90] ss:$8 sps:$4 sm:$0xff]  }
  0xc6   :  { %565 = vmatprep.subr.bf16.mxu1 %v1084_v51 }
  0xc7   :  { %v160_v31 = vrot.slane %v150_v28, %v1222_v20  ;;  %566 = vmatpush1.bf16.msra.mxu1 %v1086_v52 }
  0xc8   :  { %567 = vmatprep.subr.bf16.mxu1 %v1087_v53 }
  0xc9   :  { %v161_v32 = vadd.f32 %v160_v31, %v155_v29  ;;  %v162_v33 = vadd.f32 %v160_v31, %v156_v30 }
  0xcb   :  { %v163_v34 = vmax.f32 %v161_v32, 0.0  ;;  %v164_v35 = vmax.f32 %v162_v33, 0.0  ;;  %568 = vmatpush1.bf16.msra.mxu1 %v1089_v54 }
  0xcc   :  { %569 = vmatprep.subr.bf16.mxu1 %v1090_v55 }
  0xcd   :  { %v165_v36 = vpack.c.bf16 %v164_v35, %v163_v34 }
  0xcf   :  { %977 = vmatmul.mubr.msk.bf16.vlgmr.msra.gmra.mrb[0].mxu0 %vm120_vm0, %v165_v36  ;;  %570 = vmatpush1.bf16.msra.mxu1 %v1092_v56 }
  0xd0   :  { %571 = vmatprep.subr.bf16.mxu1 %v1093_v57  ;;  %v1130_v57 = vmov 1966171168  }
  0xd3   :  { %572 = vmatpush1.bf16.msra.mxu1 %v1095_v58  ;;  %v319_v58 = vunpack.c.l.s4 %v1130_v57 }
  0xd4   :  { %573 = vmatprep.subr.bf16.mxu1 %v1096_v59 }
  0xd5   :  { %v320_v59 = vunpack.c.0.s8 %v319_v58 }
  0xd7   :  { %574 = vmatpush1.bf16.msra.mxu1 %v1098_v61  ;;  %v1340_v61 = vsub.s32 %v320_v59, %v1216_v16 }
  0xd8   :  { %1006 = vmatprep.subr.msk.bf16.mxu1 %vm544_vm1, %v1005_v62 }
  0xdb   :  { %576 = vmatpush1.bf16.msra.mxu1 %v546_v0 }
 0x1a2   :  { %v1320_v2 = vpop.f32.mrb[0].mxu0 }
 0x1a3   :  { %v1322_v3 = vpop.f32.mrb[1].mxu0  ;;  %v281_v6 = vmul.f32 %v1320_v2, %v1320_v2 }
 0x1a4   :  { %v282_v4 = vmul.f32 %v1322_v3, %v1322_v3  ;;  %v1326_v5 = vpop.f32.mrb[2].mxu0  ;;  %v272_v10 = vsel %vm271_vm2, %v1322_v3, 0.0 }
 0x1a5   :  { %v264_v7 = vadd.f32 %v1326_v5, %v1320_v2  ;;  %v283_v8 = vmul.f32 %v1326_v5, %v1326_v5  ;;  %v257_v9 = vpop.f32.mrb[3].mxu0 }
 0x1a6   :  { %v273_v11 = vsel %vm271_vm2, %v257_v9, 0.0  ;;  %v284_v12 = vmul.f32 %v257_v9, %v257_v9  ;;  %v292_v17 = vsel %vm271_vm2, %v282_v4, 0.0  ;;  %v978_v4 = vld [vmem:[%s1468_s8 + $0x2] ss:$2 sm:$0x3] }
 0x1a7   :  { %v265_v13 = vrot.slane %v264_v7, 4  ;;  %v285_v14 = vadd.f32 %v283_v8, %v281_v6  ;;  %v274_v15 = vadd.f32 %v273_v11, %v272_v10 }
 0x1a8   :  { %v293_v18 = vsel %vm271_vm2, %v284_v12, 0.0 }
 0x1a9   :  { %v266_v21 = vadd.f32 %v265_v13, %v264_v7  ;;  %v286_v22 = vrot.slane %v285_v14, 4  ;;  %v275_v23 = vrot.slane %v274_v15, 4  ;;  %v294_v24 = vadd.f32 %v293_v18, %v292_v17 }
 0x1ab   :  { %v267_v25 = vrot.slane %v266_v21, 2  ;;  %v287_v26 = vadd.f32 %v286_v22, %v285_v14  ;;  %v276_v27 = vadd.f32 %v275_v23, %v274_v15  ;;  %v295_v28 = vrot.slane %v294_v24, 4 }
 0x1ad   :  { %v268_v29 = vadd.f32 %v267_v25, %v266_v21  ;;  %v288_v30 = vrot.slane %v287_v26, 2  ;;  %v277_v31 = vrot.slane %v276_v27, 2  ;;  %v296_v32 = vadd.f32 %v295_v28, %v294_v24  ;;  %v979_v21 = vld [vmem:[%s1468_s8 + $0x3] ss:$2 sm:$0x3] }
 0x1af   :  { %v269_v33 = vrot.slane %v268_v29, 1  ;;  %v289_v34 = vadd.f32 %v288_v30, %v287_v26  ;;  %v278_v35 = vadd.f32 %v277_v31, %v276_v27  ;;  %v297_v36 = vrot.slane %v296_v32, 2 }
 0x1b1   :  { %v270_v37 = vadd.f32 %v269_v33, %v268_v29  ;;  %v290_v38 = vrot.slane %v289_v34, 1  ;;  %v279_v39 = vrot.slane %v278_v35, 1  ;;  %v298_v40 = vadd.f32 %v297_v36, %v296_v32  ;;  %v1101_v32 = vld [vmem:[%s1470_s6] sm:$0xff]   ;;  %v1102_v33 = vld [vmem:[%s1470_s6 + $0x8] sm:$0xff]  }
 0x1b2   :  { %809 = vmatpush1.bf16.msra.mxu0 %v1101_v32  ;;  %v1105_v36 = vld [vmem:[%s1470_s6 + $0x20] sm:$0xff]  }
 0x1b3   :  { %v291_v41 = vadd.f32 %v290_v38, %v289_v34  ;;  %v301_v42 = vmul.f32 0.0625, %v270_v37  ;;  %v280_v43 = vadd.f32 %v279_v39, %v278_v35  ;;  %v299_v44 = vrot.slane %v298_v40, 1  ;;  %810 = vmatprep.subr.bf16.mxu0 %v1126_v1  ;;  %v1103_v34 = vld [vmem:[%s1470_s6 + $0x10] sm:$0xff]   ;;  %v1104_v35 = vld [vmem:[%s1470_s6 + $0x18] sm:$0xff]   ;;  %v1106_v37 = vld [vmem:[%s1470_s6 + $0x28] sm:$0xff]  }
 0x1b4   :  { %v1107_v38 = vld [vmem:[%s1470_s6 + $0x30] sm:$0xff]   ;;  %v1108_v39 = vld [vmem:[%s1470_s6 + $0x38] sm:$0xff]  }
 0x1b5   :  { %v303_v45 = vmul.f32 0.0625, %v291_v41  ;;  %v305_v46 = vmul.f32 %v301_v42, %v301_v42  ;;  %v300_v47 = vadd.f32 %v299_v44, %v298_v40  ;;  %v302_v48 = vmul.f32 0.0625, %v280_v43  ;;  %v1109_v40 = vld [vmem:[%s1470_s6 + $0x40] sm:$0xff]   ;;  %v1110_v41 = vld [vmem:[%s1470_s6 + $0x48] ss:$0 sps:$4 sm:$0x77]  }
 0x1b6   :  { %811 = vmatpush1.bf16.msra.mxu0 %v1102_v33 }
 0x1b7   :  { %v307_v49 = vsub.f32 %v303_v45, %v305_v46  ;;  %v304_v50 = vmul.f32 0.0625, %v300_v47  ;;  %v306_v51 = vmul.f32 %v302_v48, %v302_v48  ;;  %812 = vmatprep.subr.bf16.mxu0 %v1126_v1 }
 0x1b9   :  { %v309_v52 = vmax.f32 %v307_v49, 0.0  ;;  %v308_v53 = vsub.f32 %v304_v50, %v306_v51 }
 0x1ba   :  { %813 = vmatpush1.bf16.msra.mxu0 %v1103_v34 }
 0x1bb   :  { %v311_v54 = vadd.f32 1e-05, %v309_v52  ;;  %v310_v55 = vmax.f32 %v308_v53, 0.0  ;;  %814 = vmatprep.subr.bf16.mxu0 %v1126_v1 }
 0x1bd   :  { %v312_v56 = vadd.f32 1e-05, %v310_v55  ;;  %1115 = vrsqrt.f32 %v311_v54 }
 0x1be   :  { %815 = vmatpush1.bf16.msra.mxu0 %v1104_v35 }
 0x1bf   :  { %1117 = vrsqrt.f32 %v312_v56  ;;  %816 = vmatprep.subr.bf16.mxu0 %v1126_v1 }
 0x1c2   :  { %817 = vmatpush1.bf16.msra.mxu0 %v1105_v36 }
 0x1c3   :  { %818 = vmatprep.subr.bf16.mxu0 %v1126_v1 }
 0x1c6   :  { %819 = vmatpush1.bf16.msra.mxu0 %v1106_v37 }
 0x1c7   :  { %v1116_v60 = vpop.eup %1115  ;;  %820 = vmatprep.subr.bf16.mxu0 %v1126_v1 }
 0x1c9   :  { %v1118_v62 = vpop.eup %1117 }
 0x1ca   :  { %v317_v63 = vcombine.low %v1116_v60, %v1118_v62  ;;  %821 = vmatpush1.bf16.msra.mxu0 %v1107_v38  ;;  %v1008_v38 = vld [vmem:[%s1468_s8 + $0x6] ss:$2 sm:$0x3] }
 0x1cb   :  { %822 = vmatprep.subr.bf16.mxu0 %v1126_v1 }
 0x1cc   :  { %v324_v0 = vrot.slane %v317_v63, %v1340_v61 }
 0x1ce   :  { %v331_v6 = vrot.slane %v324_v0, %v1340_v61  ;;  %823 = vmatpush1.bf16.msra.mxu0 %v1108_v39 }
 0x1cf   :  { %824 = vmatprep.subr.bf16.mxu0 %v1126_v1 }
 0x1d0   :  { %v333_v7 = vmul.f32 %v978_v4, %v331_v6 }
 0x1d2   :  { %v338_v8 = vrot.slane %v333_v7, %v1222_v20  ;;  %v342_v10 = vrot.slane %v333_v7, %v1219_v19  ;;  %825 = vmatpush1.bf16.msra.mxu0 %v1109_v40 }
 0x1d3   :  { %826 = vmatprep.subr.bf16.mxu0 %v1126_v1 }
 0x1d4   :  { %v346_v11 = vmul.f32 %v342_v10, %v302_v48  ;;  %v369_v12 = vmul.f32 %v342_v10, %v257_v9  ;;  %v345_v13 = vmul.f32 %v338_v8, %v301_v42  ;;  %v367_v16 = vmul.f32 %v342_v10, %v1322_v3 }
 0x1d5   :  { %v366_v14 = vmul.f32 %v338_v8, %v1320_v2  ;;  %v368_v15 = vmul.f32 %v338_v8, %v1326_v5  ;;  %v806_v42 = vsel %vm804_vm3, %v1110_v41, 0 }
 0x1d6   :  { %v349_v17 = vcombine.low %v345_v13, %v346_v11  ;;  %827 = vmatpush1.bf16.msra.mxu0 %v806_v42 }
 0x1d8   :  { %v356_v18 = vrot.slane %v349_v17, %v1340_v61 }
 0x1da   :  { %v363_v22 = vrot.slane %v356_v18, %v1340_v61 }
 0x1dc   :  { %v365_v23 = vsub.f32 %v979_v21, %v363_v22 }
 0x1de   :  { %v378_v24 = vrot.slane %v365_v23, %v1219_v19  ;;  %v374_v9 = vrot.slane %v365_v23, %v1222_v20 }
 0x1e0   :  { %v382_v25 = vadd.f32 %v378_v24, %v367_v16  ;;  %v384_v3 = vadd.f32 %v378_v24, %v369_v12  ;;  %v381_v26 = vadd.f32 %v374_v9, %v366_v14  ;;  %v383_v2 = vadd.f32 %v374_v9, %v368_v15 }
 0x1e2   :  { %v386_v27 = vmax.f32 %v382_v25, 0.0  ;;  %v388_v5 = vmax.f32 %v384_v3, 0.0  ;;  %v385_v28 = vmax.f32 %v381_v26, 0.0  ;;  %v387_v29 = vmax.f32 %v383_v2, 0.0 }
 0x1e4   :  { %v390_v30 = vpack.c.bf16 %v388_v5, %v386_v27  ;;  %v389_v31 = vpack.c.bf16 %v387_v29, %v385_v28 }
 0x1e6   :  { %1007 = vmatprep.mubr.msk.bf16.mxu1 %vm271_vm2, %v390_v30 }
 0x1e7   :  { %584 = vmatmul.mubr.bf16.vlgmr.msra.gmra.mrb[0].mxu1 %v389_v31 }
 0x2ba   :  { %v1399_v43 = vpop.f32.mrb[0].mxu1 }
 0x2bb   :  { %v1401_v44 = vpop.f32.mrb[1].mxu1  ;;  %v615_v1 = vmul.f32 %v1399_v43, %v1399_v43 }
 0x2bc   :  { %v616_v45 = vmul.f32 %v1401_v44, %v1401_v44  ;;  %v1405_v46 = vpop.f32.mrb[2].mxu1  ;;  %v606_v50 = vsel %vm605_vm4, %v1401_v44, 0.0 }
 0x2bd   :  { %v598_v47 = vadd.f32 %v1405_v46, %v1399_v43  ;;  %v617_v48 = vmul.f32 %v1405_v46, %v1405_v46  ;;  %v591_v49 = vpop.f32.mrb[3].mxu1 }
 0x2be   :  { %v607_v51 = vsel %vm605_vm4, %v591_v49, 0.0  ;;  %v618_v52 = vmul.f32 %v591_v49, %v591_v49  ;;  %v626_v56 = vsel %vm605_vm4, %v616_v45, 0.0 }
 0x2bf   :  { %v599_v53 = vrot.slane %v598_v47, 4  ;;  %v619_v54 = vadd.f32 %v617_v48, %v615_v1  ;;  %v608_v55 = vadd.f32 %v607_v51, %v606_v50 }
 0x2c0   :  { %v627_v57 = vsel %vm605_vm4, %v618_v52, 0.0 }
 0x2c1   :  { %v600_v58 = vadd.f32 %v599_v53, %v598_v47  ;;  %v620_v59 = vrot.slane %v619_v54, 4  ;;  %v609_v60 = vrot.slane %v608_v55, 4  ;;  %v628_v62 = vadd.f32 %v627_v57, %v626_v56 }
 0x2c3   :  { %v601_v63 = vrot.slane %v600_v58, 2  ;;  %v621_v0 = vadd.f32 %v620_v59, %v619_v54  ;;  %v610_v4 = vadd.f32 %v609_v60, %v608_v55  ;;  %v629_v6 = vrot.slane %v628_v62, 4  ;;  %v1009_v54 = vld [vmem:[%s1468_s8 + $0x7] ss:$2 sm:$0x3] }
 0x2c5   :  { %v602_v7 = vadd.f32 %v601_v63, %v600_v58  ;;  %v622_v8 = vrot.slane %v621_v0, 2  ;;  %v611_v10 = vrot.slane %v610_v4, 2  ;;  %v630_v11 = vadd.f32 %v629_v6, %v628_v62 }
 0x2c6   :  { %v1131_v6 = vmov 0.0  }
 0x2c7   :  { %v603_v12 = vrot.slane %v602_v7, 1  ;;  %v623_v13 = vadd.f32 %v622_v8, %v621_v0  ;;  %v612_v16 = vadd.f32 %v611_v10, %v610_v4  ;;  %v631_v14 = vrot.slane %v630_v11, 2  ;;  %1027 = vmatprep.subr.bf16.mxu1 %v1131_v6  ;;  %1031 = vmatprep.mubr.msk.bf16.mxu1 %vm1132_vm6, %v1131_v6 }
 0x2c9   :  { %v604_v15 = vadd.f32 %v603_v12, %v602_v7  ;;  %v624_v17 = vrot.slane %v623_v13, 1  ;;  %v613_v18 = vrot.slane %v612_v16, 1  ;;  %v632_v21 = vadd.f32 %v631_v14, %v630_v11 }
 0x2cb   :  { %v625_v22 = vadd.f32 %v624_v17, %v623_v13  ;;  %v635_v23 = vmul.f32 0.0625, %v604_v15  ;;  %v614_v24 = vadd.f32 %v613_v18, %v612_v16  ;;  %v633_v9 = vrot.slane %v632_v21, 1 }
 0x2cd   :  { %v637_v25 = vmul.f32 0.0625, %v625_v22  ;;  %v639_v3 = vmul.f32 %v635_v23, %v635_v23  ;;  %v634_v26 = vadd.f32 %v633_v9, %v632_v21  ;;  %v636_v2 = vmul.f32 0.0625, %v614_v24 }
 0x2cf   :  { %v641_v27 = vsub.f32 %v637_v25, %v639_v3  ;;  %v638_v5 = vmul.f32 0.0625, %v634_v26  ;;  %v640_v28 = vmul.f32 %v636_v2, %v636_v2 }
 0x2d1   :  { %v643_v29 = vmax.f32 %v641_v27, 0.0  ;;  %v642_v30 = vsub.f32 %v638_v5, %v640_v28 }
 0x2d3   :  { %v645_v31 = vadd.f32 1e-05, %v643_v29  ;;  %v644_v32 = vmax.f32 %v642_v30, 0.0 }
 0x2d5   :  { %v646_v33 = vadd.f32 1e-05, %v644_v32  ;;  %1119 = vrsqrt.f32 %v645_v31 }
 0x2d7   :  { %1121 = vrsqrt.f32 %v646_v33 }
 0x2df   :  { %v1120_v34 = vpop.eup %1119 }
 0x2e1   :  { %v1122_v35 = vpop.eup %1121 }
 0x2e2   :  { %v651_v36 = vcombine.low %v1120_v34, %v1122_v35 }
 0x2e4   :  { %v658_v37 = vrot.slane %v651_v36, %v1340_v61 }
 0x2e6   :  { %v665_v39 = vrot.slane %v658_v37, %v1340_v61  ;;  %v849_v37 = vld [vmem:[%s1468_s8 + $0xa] sm:$0x1] }
 0x2e8   :  { %v667_v40 = vmul.f32 %v1008_v38, %v665_v39 }
 0x2ea   :  { %v672_v41 = vrot.slane %v667_v40, %v1222_v20  ;;  %v676_v42 = vrot.slane %v667_v40, %v1219_v19  ;;  %v850_v40 = vld [vmem:[%s1468_s8 + $0xb] sm:$0x1] }
 0x2ec   :  { %v679_v45 = vmul.f32 %v672_v41, %v635_v23  ;;  %v680_v1 = vmul.f32 %v676_v42, %v636_v2  ;;  %v701_v47 = vmul.f32 %v676_v42, %v1401_v44  ;;  %v703_v48 = vmul.f32 %v676_v42, %v591_v49 }
 0x2ed   :  { %v700_v50 = vmul.f32 %v672_v41, %v1399_v43  ;;  %v702_v51 = vmul.f32 %v672_v41, %v1405_v46 }
 0x2ee   :  { %v683_v52 = vcombine.low %v679_v45, %v680_v1 }
 0x2f0   :  { %v690_v53 = vrot.slane %v683_v52, %v1340_v61 }
 0x2f2   :  { %v697_v55 = vrot.slane %v690_v53, %v1340_v61  ;;  %v1111_v61 = vld [vmem:[%s1471_s7] sm:$0xff]  }
 0x2f3   :  { %1028 = vmatpush3.bf16.msra.mxu1 %v1111_v61 }
 0x2f4   :  { %v699_v56 = vsub.f32 %v1009_v54, %v697_v55  ;;  %1029 = vmatprep.subr.bf16.mxu1 %v1131_v6  ;;  %v902_v55 = vstv %s1472_s1 }
 0x2f6   :  { %v708_v57 = vrot.slane %v699_v56, %v1222_v20  ;;  %v712_v58 = vrot.slane %v699_v56, %v1219_v19  ;;  %v1112_v19 = vld [vmem:[%s1471_s7 + $0x8] sm:$0x7f]  }
 0x2f7   :  { %v919_v7 = vsel %vm917_vm5, %v1112_v19, 0 }
 0x2f8   :  { %v716_v44 = vadd.f32 %v712_v58, %v701_v47  ;;  %v718_v49 = vadd.f32 %v712_v58, %v703_v48  ;;  %v715_v59 = vadd.f32 %v708_v57, %v700_v50  ;;  %v717_v43 = vadd.f32 %v708_v57, %v702_v51  ;;  %1030 = vmatpush3.bf16.msra.mxu1 %v919_v7 }
 0x2fa   :  { %v722_v60 = vmax.f32 %v718_v49, 0.0  ;;  %v720_v46 = vmax.f32 %v716_v44, 0.0  ;;  %v719_v62 = vmax.f32 %v715_v59, 0.0  ;;  %v721_v63 = vmax.f32 %v717_v43, 0.0 }
 0x2fc   :  { %v724_v0 = vpack.c.bf16 %v722_v60, %v720_v46  ;;  %v723_v4 = vpack.c.bf16 %v721_v63, %v719_v62 }
 0x2fe   :  { %1020 = vmatprep.mubr.msk.bf16.mxu0 %vm605_vm4, %v724_v0 }
 0x2ff   :  { %841 = vmatmul.mubr.bf16.vlgmr.msra.gmra.mrb[4].mxu0 %v723_v4 }
 0x3d2   :  { %v842_v8 = vpop.f32.mrb[4].mxu0 }
 0x3d3   :  { %v861_v10 = vmul.f32 %v842_v8, %v842_v8  ;;  %v844_v11 = vpop.f32.mrb[5].mxu0  ;;  %v852_v13 = vsel %vm851_vm7, %v842_v8, 0.0 }
 0x3d4   :  { %v845_v12 = vpop.f32.mrb[6].mxu0 }
 0x3d5   :  { %v853_v16 = vsel %vm851_vm7, %v845_v12, 0.0  ;;  %v862_v14 = vmul.f32 %v845_v12, %v845_v12  ;;  %v847_v15 = vpop.f32.mrb[7].mxu0  ;;  %v863_v18 = vsel %vm851_vm7, %v861_v10, 0.0 }
 0x3d6   :  { %v854_v17 = vadd.f32 %v853_v16, %v852_v13 }
 0x3d7   :  { %v864_v21 = vsel %vm851_vm7, %v862_v14, 0.0 }
 0x3d8   :  { %v855_v22 = vrot.slane %v854_v17, 4  ;;  %v865_v23 = vadd.f32 %v864_v21, %v863_v18 }
 0x3da   :  { %v856_v24 = vadd.f32 %v855_v22, %v854_v17  ;;  %v866_v9 = vrot.slane %v865_v23, 4 }
 0x3dc   :  { %v857_v25 = vrot.slane %v856_v24, 2  ;;  %v867_v3 = vadd.f32 %v866_v9, %v865_v23 }
 0x3de   :  { %v858_v26 = vadd.f32 %v857_v25, %v856_v24  ;;  %v868_v2 = vrot.slane %v867_v3, 2 }
 0x3e0   :  { %v859_v27 = vrot.slane %v858_v26, 1  ;;  %v869_v5 = vadd.f32 %v868_v2, %v867_v3 }
 0x3e2   :  { %v860_v28 = vadd.f32 %v859_v27, %v858_v26  ;;  %v870_v29 = vrot.slane %v869_v5, 1 }
 0x3e4   :  { %v871_v30 = vadd.f32 %v870_v29, %v869_v5  ;;  %v872_v31 = vmul.f32 0.0625, %v860_v28 }
 0x3e6   :  { %v873_v32 = vmul.f32 0.0625, %v871_v30  ;;  %v874_v33 = vmul.f32 %v872_v31, %v872_v31 }
 0x3e8   :  { %v875_v34 = vsub.f32 %v873_v32, %v874_v33 }
 0x3ea   :  { %v876_v35 = vmax.f32 %v875_v34, 0.0 }
 0x3ec   :  { %v877_v36 = vadd.f32 1e-05, %v876_v35 }
 0x3ee   :  { %1123 = vrsqrt.f32 %v877_v36 }
 0x3f8   :  { %v1124_v38 = vpop.eup %1123 }
 0x3f9   :  { %v879_v39 = vmul.f32 %v1124_v38, %v849_v37 }
 0x3fb   :  { %v880_v41 = vmul.f32 %v879_v39, %v872_v31  ;;  %v885_v42 = vrot.slane %v879_v39, %v1222_v20 }
 0x3fd   :  { %v881_v45 = vsub.f32 %v850_v40, %v880_v41  ;;  %v886_v1 = vmul.f32 %v885_v42, %v842_v8  ;;  %v887_v47 = vmul.f32 %v885_v42, %v845_v12 }
 0x3ff   :  { %v891_v48 = vrot.slane %v881_v45, %v1222_v20 }
 0x401   :  { %v892_v50 = vadd.f32 %v891_v48, %v886_v1  ;;  %v893_v51 = vadd.f32 %v891_v48, %v887_v47 }
 0x403   :  { %v894_v52 = vmax.f32 %v892_v50, 0.0  ;;  %v895_v53 = vmax.f32 %v893_v51, 0.0 }
 0x405   :  { %v896_v54 = vpack.c.bf16 %v895_v53, %v894_v52 }
 0x407   :  { %1032 = vmatmul.mubr.msk.bf16.vlgmr.msra.gmra.mrb[4].mxu1 %vm851_vm7, %v896_v54 }
 0x4da   :  { %v955_v56 = vpop.f32.mrb[4].mxu1 }
 0x4db   :  { %v956_v57 = vadd.f32 %v955_v56, %v902_v55  ;;  %v1033_v58 = vpop.f32.mrb[5].mxu1 }
 0x4dc   :  { %v958_v44 = vpop.f32.mrb[6].mxu1 }
 0x4dd   :  { %963 = vst.msk [vmem:[%s1473_s9] sm:$0xff] %vm962_vm8, %v956_v57  ;;  %v959_v20 = vadd.f32 %v958_v44, %v902_v55  ;;  %v1034_v49 = vpop.f32.mrb[7].mxu1 }
 0x4df   :  { %964 = vst.msk [vmem:[%s1473_s9 + $0x8] sm:$0xff] %vm962_vm8, %v959_v20 }

</bundles_post_ra>
